<compile_context>
chip_gen: v7x
topology: tpu7x:2x2x1
jax: 0.10.0
libtpu: 0.0.40
codegen_flags: <defaults>
</compile_context>

<pallas_src>
import functools

import numpy as np
import jax
import jax.numpy as jnp
from jax.experimental import pallas as pl
from jax.experimental.pallas import tpu as pltpu


# ----------------------------------------------------------------------------
# Fused kernel: distance + argmin + on-device hit/miss select + output packing.
# ----------------------------------------------------------------------------
def _fused_forward_kernel(scal_ref, q_ref, obs_ref, act_ref, out_ref,
                          *, out_size, min_dist_sq, peak):
    """Args:
        scal_ref: (3,) i32 SMEM = [count, state_idx, move_sign (+1/-1)]
        q_ref   : (1, F)          f32 VMEM query
        obs_ref : (N_MAX, F)      f32 VMEM observation table
        act_ref : (N_MAX, OUT_PAD) f32 VMEM action table (lanes >= out_size are 0)
        out_ref : (1, OUT_PAD)    f32 VMEM packed output:
                    lanes [0, out_size)  -> action
                    lane  out_size       -> argmin index (as f32)
                    lane  out_size + 1   -> hit flag (0.0 / 1.0)
                    lane  out_size + 2   -> min squared distance
    """
    n_max = obs_ref.shape[0]
    out_pad = out_ref.shape[1]

    count = scal_ref[0]
    state_idx = scal_ref[1]
    move_val = scal_ref[2].astype(jnp.float32) * jnp.float32(peak)

    # Squared distances to every table row; unused tail rows are masked to +big
    # so they can never win the min (and can never yield an OOB index).
    diff = obs_ref[...] - q_ref[...]                              # (N, F)
    d2 = jnp.sum(diff * diff, axis=-1, keepdims=True)             # (N, 1)
    row_ids = jax.lax.broadcasted_iota(jnp.int32, (n_max, 1), 0)  # (N, 1)
    big = jnp.float32(jnp.finfo(jnp.float32).max)
    d2 = jnp.where(row_ids < count, d2, big)

    min_d2 = jnp.min(d2, axis=0, keepdims=True)                   # (1, 1)
    # First (lowest-index) matching row, matching the reference's strict-< scan.
    idx2d = jnp.min(jnp.where(d2 == min_d2, row_ids, jnp.int32(n_max - 1)),
                    axis=0, keepdims=True)                        # (1, 1) i32

    # Hit decision: squared distance vs min_dist**2 (no sqrt needed).
    hit2d = jnp.logical_and(count > 0, min_d2 < jnp.float32(min_dist_sq))

    # Table-hit action: VPU masked row-select + cross-sublane sum (no MXU).
    sel = row_ids == idx2d                                        # (N, 1)
    gathered = jnp.sum(jnp.where(sel, act_ref[...], jnp.float32(0.0)),
                       axis=0, keepdims=True)                     # (1, OUT_PAD)

    # Table-miss action: one-hot +/-peak at the current state index.
    lane = jax.lax.broadcasted_iota(jnp.int32, (1, out_pad), 1)   # (1, OUT_PAD)
    move_a = jnp.where(lane == state_idx, move_val, jnp.float32(0.0))

    # Select on-device, then pack the scalar bookkeeping into spare lanes.
    packed = jnp.where(hit2d, gathered, move_a)                   # (1, OUT_PAD)
    packed = jnp.where(lane == out_size, idx2d.astype(jnp.float32), packed)
    packed = jnp.where(lane == out_size + 1, hit2d.astype(jnp.float32), packed)
    packed = jnp.where(lane == out_size + 2, min_d2, packed)
    out_ref[...] = packed


@functools.lru_cache(maxsize=None)
def _build_forward_fn(n_max, f, out_size, out_pad, min_dist, peak):
    """Builds (once per shape config) the jitted fused-forward pallas_call."""
    kernel = functools.partial(_fused_forward_kernel,
                               out_size=out_size,
                               min_dist_sq=float(min_dist) ** 2,
                               peak=float(peak))
    smem = pltpu.MemorySpace.SMEM
    vmem = pltpu.MemorySpace.VMEM
    call = pl.pallas_call(
        kernel,
        out_shape=jax.ShapeDtypeStruct((1, out_pad), jnp.float32),
        # No grid: single invocation, whole arrays resident in VMEM/SMEM,
        # no double buffering, no per-step pipeline bookkeeping.
        in_specs=[pl.BlockSpec(memory_space=smem),    # packed scalars
                  pl.BlockSpec(memory_space=vmem),    # query (1, F)
                  pl.BlockSpec(memory_space=vmem),    # obs table (N, F)
                  pl.BlockSpec(memory_space=vmem)],   # act table (N, OUT_PAD)
        out_specs=pl.BlockSpec(memory_space=vmem),
    )
    return jax.jit(call)


# ----------------------------------------------------------------------------
# Host-side stateful wrapper mirroring the PyTorch `Net` semantics.
# ----------------------------------------------------------------------------
class Net:
    # Fixed table capacity: one VMEM block (64*128*4B = 32 KiB, trivial on any chip).
    # TODO(synk): if the table ever needs to grow large, tile the N axis with a
    # grid (row axis last, "arbitrary") + running (min, argmin) scratch and bf16
    # storage on v6e/v7x; re-derive tile size against v7x's 64 MiB VMEM.
    N_MAX = 64

    def __init__(self, model_params):
        model_params = self.ingest_params_lvl1(model_params)
        self.ins = model_params['in features']
        self.out_size = model_params['number of outputs']
        self.eta = model_params['noise limit']
        self.nu = 0.0
        self.min_dist = 0.1
        self.in_table = False
        self.idx = 0
        self.x_0 = None
        self.state = 0
        self.peak = 0.1
        self.val = None
        # Lane-dense packed output width: action lanes + 3 scalar lanes.
        self.out_pad = ((self.out_size + 3 + 127) // 128) * 128
        # Persistent device-resident tables; never re-concatenated per forward.
        self.count = 0
        self.obs_table = jnp.zeros((self.N_MAX, self.ins), dtype=jnp.float32)
        self.act_table = jnp.zeros((self.N_MAX, self.out_pad), dtype=jnp.float32)
        self._forward_fn = _build_forward_fn(self.N_MAX, self.ins, self.out_size,
                                             self.out_pad, self.min_dist, self.peak)
        self._rng = np.random.default_rng(0)   # deterministic stand-in for np.random

    @staticmethod
    def ingest_params_lvl1(model_params):
        assert type(model_params) is dict
        default_params = {'in features': 128, 'number of outputs': 18}
        default_params.update(model_params)
        return default_params

    # ---- table maintenance (replaces per-call jnp.concatenate) --------------
    def add_entry(self, x, action):
        assert self.count < self.N_MAX, "observation table capacity exceeded"
        x = jnp.asarray(x, dtype=jnp.float32).reshape(self.ins)
        a = jnp.asarray(action, dtype=jnp.float32).reshape(self.out_size)
        self.obs_table = self.obs_table.at[self.count].set(x)
        self.act_table = self.act_table.at[self.count, :self.out_size].set(a)
        self.count += 1

    # ---- forward -------------------------------------------------------------
    def forward(self, x):
        self.reset_state()
        x = jnp.asarray(x, dtype=jnp.float32).reshape(1, self.ins)
        # Single packed scalar upload per forward:
        #   [live row count, current state index, +/-1 move sign]
        # (deterministic stand-in for np.random.choice([-peak, peak])).
        move_sign = 1 if self._rng.random() < 0.5 else -1
        scalars = jnp.asarray([self.count, int(self.state), move_sign],
                              dtype=jnp.int32)

        out = self._forward_fn(scalars, x, self.obs_table, self.act_table)
        # Single D2H transfer per forward (device_get synchronizes) — required
        # anyway because the reference returns a numpy array.
        packed = np.asarray(jax.device_get(out)).reshape(-1)

        action = packed[:self.out_size].copy()
        self.in_table = bool(packed[self.out_size + 1] > 0.5)
        if self.count > 0:
            self.idx = int(packed[self.out_size])
        if not self.in_table:
            self.state += 0.25       # reference advances state only on the move path

        # TODO(synk): reference calls self.repeat(action) and returns self.val, but
        # `repeat`/`val` are undefined in the provided module; we return the action.
        self.val = action
        return self.val

    # ---- helpers mirroring the reference -------------------------------------
    def reset_state(self):
        self.in_table = False
        if self.state > self.out_size - 1:
            self.state = 0

    def zero_out(self, x):
        if self.x_0 is None:
            self.x_0 = x
            return x
        x1 = self.x_0 - x
        self.x_0 = x
        return x1

    def get_random_action(self):
        a = self._rng.normal(0, 0.3, (self.out_size,))
        action = np.clip(a, -1.0, 1.0)
        zeros = np.zeros((self.out_size,))
        choice = self._rng.choice([0.0, 1.0], p=[0.3, 0.7])
        return zeros if choice == 0 else action


# ----------------------------------------------------------------------------
if __name__ == "__main__":
    F, OUT, N = 128, 18, 16
    key = jax.random.PRNGKey(0)
    k1, k2 = jax.random.split(key)

    net = Net({'in features': F, 'number of outputs': OUT, 'noise limit': 0.1})

    # Deterministically pre-populate the persistent device tables.
    obs_rows = jax.random.normal(k1, (N, F), dtype=jnp.float32)
    act_rows = 0.1 * jax.random.normal(k2, (N, OUT), dtype=jnp.float32)
    for i in range(N):
        net.add_entry(obs_rows[i], act_rows[i])

    # Explicit single kernel invocation, blocked on, per the harness contract.
    raw = net._forward_fn(jnp.asarray([net.count, 0, 1], dtype=jnp.int32),
                          obs_rows[3:4], net.obs_table, net.act_table)
    jax.block_until_ready(raw)

    # Path 1: exact table row -> squared distance 0 < min_dist**2 -> table hit.
    out_hit = net.forward(obs_rows[3:4])
    assert out_hit.shape == (OUT,)
    assert net.in_table and net.idx == 3
    assert np.allclose(out_hit, np.asarray(jax.device_get(act_rows[3])), atol=1e-6)

    # Path 2: far from every row -> miss -> one-hot move action at state index 0.
    out_miss = net.forward(obs_rows[0:1] + 10.0)
    assert out_miss.shape == (OUT,)
    assert not net.in_table
    assert np.count_nonzero(out_miss) <= 1
    assert abs(abs(out_miss[0]) - net.peak) < 1e-6
    assert abs(net.state - 0.25) < 1e-9

    # Path 3: empty table -> kernel masks all rows -> miss path (no host branching).
    net_empty = Net({'in features': F, 'number of outputs': OUT, 'noise limit': 0.1})
    out_empty = net_empty.forward(obs_rows[0:1])
    assert not net_empty.in_table and np.count_nonzero(out_empty) <= 1

    print("KERNEL_OK")
</pallas_src>

<mosaic_0001>
module attributes {stable_mosaic.version = 11 : i64} {
  func.func @_fused_forward_kernel(%arg0: memref<3xi32, #tpu.memory_space<smem>>, %arg1: memref<1x128xf32, #tpu.memory_space<vmem>>, %arg2: memref<64x128xf32, #tpu.memory_space<vmem>>, %arg3: memref<64x128xf32, #tpu.memory_space<vmem>>, %arg4: memref<1x128xf32, #tpu.memory_space<vmem>>) attributes {dimension_semantics = [], scalar_prefetch = 0 : i64, scratch_operands = 0 : i64, tpu.core_type = #tpu.core_type<tc>} {
    %c0 = arith.constant 0 : index
    %0 = memref.load %arg0[%c0] : memref<3xi32, #tpu.memory_space<smem>>
    %c1 = arith.constant 1 : index
    %1 = memref.load %arg0[%c1] : memref<3xi32, #tpu.memory_space<smem>>
    %c2 = arith.constant 2 : index
    %2 = memref.load %arg0[%c2] : memref<3xi32, #tpu.memory_space<smem>>
    %3 = arith.sitofp %2 : i32 to f32
    %cst = arith.constant 1.000000e-01 : f32
    %4 = arith.mulf %3, %cst : f32
    %c0_0 = arith.constant 0 : index
    %c0_1 = arith.constant 0 : index
    %5 = vector.load %arg2[%c0_0, %c0_1] : memref<64x128xf32, #tpu.memory_space<vmem>>, vector<64x128xf32>
    %c0_2 = arith.constant 0 : index
    %c0_3 = arith.constant 0 : index
    %6 = vector.load %arg1[%c0_2, %c0_3] : memref<1x128xf32, #tpu.memory_space<vmem>>, vector<1x128xf32>
    %7 = vector.broadcast %6 : vector<1x128xf32> to vector<64x128xf32>
    %8 = arith.subf %5, %7 : vector<64x128xf32>
    %9 = arith.mulf %8, %8 : vector<64x128xf32>
    %cst_4 = arith.constant dense<0.000000e+00> : vector<64xf32>
    %10 = vector.multi_reduction <add>, %9, %cst_4 [1] : vector<64x128xf32> to vector<64xf32>
    %11 = vector.shape_cast %10 : vector<64xf32> to vector<64x1xf32>
    %12 = tpu.iota {dimensions = array<i32: 0>} : vector<64x1xi32>
    %13 = vector.broadcast %0 : i32 to vector<64x1xi32>
    %14 = arith.cmpi slt, %12, %13 : vector<64x1xi32>
    %cst_5 = arith.constant 3.40282347E+38 : f32
    %15 = vector.broadcast %cst_5 : f32 to vector<64x1xf32>
    %16 = arith.select %14, %11, %15 : vector<64x1xi1>, vector<64x1xf32>
    %cst_6 = arith.constant dense<0x7F800000> : vector<1xf32>
    %17 = vector.multi_reduction <minimumf>, %16, %cst_6 [0] : vector<64x1xf32> to vector<1xf32>
    %18 = vector.shape_cast %17 : vector<1xf32> to vector<1x1xf32>
    %19 = vector.broadcast %18 : vector<1x1xf32> to vector<64x1xf32>
    %20 = arith.cmpf oeq, %16, %19 : vector<64x1xf32>
    %c63_i32 = arith.constant 63 : i32
    %21 = vector.broadcast %c63_i32 : i32 to vector<64x1xi32>
    %22 = arith.select %20, %12, %21 : vector<64x1xi1>, vector<64x1xi32>
    %cst_7 = arith.constant dense<2147483647> : vector<1xi32>
    %23 = vector.multi_reduction <minsi>, %22, %cst_7 [0] : vector<64x1xi32> to vector<1xi32>
    %24 = vector.shape_cast %23 : vector<1xi32> to vector<1x1xi32>
    %c0_i32 = arith.constant 0 : i32
    %25 = arith.cmpi sgt, %0, %c0_i32 : i32
    %cst_8 = arith.constant 0.00999999977 : f32
    %26 = vector.broadcast %cst_8 : f32 to vector<1x1xf32>
    %27 = arith.cmpf olt, %18, %26 : vector<1x1xf32>
    %28 = vector.broadcast %25 : i1 to vector<1x1xi1>
    %29 = arith.andi %28, %27 : vector<1x1xi1>
    %30 = vector.broadcast %24 : vector<1x1xi32> to vector<64x1xi32>
    %31 = arith.cmpi eq, %12, %30 : vector<64x1xi32>
    %c0_9 = arith.constant 0 : index
    %c0_10 = arith.constant 0 : index
    %32 = vector.load %arg3[%c0_9, %c0_10] : memref<64x128xf32, #tpu.memory_space<vmem>>, vector<64x128xf32>
    %cst_11 = arith.constant 0.000000e+00 : f32
    %33 = vector.shape_cast %31 : vector<64x1xi1> to vector<64x1xi1>
    %34 = vector.broadcast %33 : vector<64x1xi1> to vector<64x128xi1>
    %35 = vector.broadcast %cst_11 : f32 to vector<64x128xf32>
    %36 = arith.select %34, %32, %35 : vector<64x128xi1>, vector<64x128xf32>
    %cst_12 = arith.constant dense<0.000000e+00> : vector<128xf32>
    %37 = vector.multi_reduction <add>, %36, %cst_12 [0] : vector<64x128xf32> to vector<128xf32>
    %38 = vector.shape_cast %37 : vector<128xf32> to vector<1x128xf32>
    %39 = tpu.iota {dimensions = array<i32: 1>} : vector<1x128xi32>
    %40 = vector.broadcast %1 : i32 to vector<1x128xi32>
    %41 = arith.cmpi eq, %39, %40 : vector<1x128xi32>
    %cst_13 = arith.constant 0.000000e+00 : f32
    %42 = vector.broadcast %4 : f32 to vector<1x128xf32>
    %43 = vector.broadcast %cst_13 : f32 to vector<1x128xf32>
    %44 = arith.select %41, %42, %43 : vector<1x128xi1>, vector<1x128xf32>
    %45 = vector.shape_cast %29 : vector<1x1xi1> to vector<1x1xi1>
    %46 = vector.broadcast %45 : vector<1x1xi1> to vector<1x128xi1>
    %47 = arith.select %46, %38, %44 : vector<1x128xi1>, vector<1x128xf32>
    %c18_i32 = arith.constant 18 : i32
    %48 = vector.broadcast %c18_i32 : i32 to vector<1x128xi32>
    %49 = arith.cmpi eq, %39, %48 : vector<1x128xi32>
    %50 = arith.sitofp %24 : vector<1x1xi32> to vector<1x1xf32>
    %51 = vector.shape_cast %50 : vector<1x1xf32> to vector<1x1xf32>
    %52 = vector.broadcast %51 : vector<1x1xf32> to vector<1x128xf32>
    %53 = arith.select %49, %52, %47 : vector<1x128xi1>, vector<1x128xf32>
    %c19_i32 = arith.constant 19 : i32
    %54 = vector.broadcast %c19_i32 : i32 to vector<1x128xi32>
    %55 = arith.cmpi eq, %39, %54 : vector<1x128xi32>
    %56 = arith.extui %29 : vector<1x1xi1> to vector<1x1xi32>
    %57 = arith.sitofp %56 : vector<1x1xi32> to vector<1x1xf32>
    %58 = vector.shape_cast %57 : vector<1x1xf32> to vector<1x1xf32>
    %59 = vector.broadcast %58 : vector<1x1xf32> to vector<1x128xf32>
    %60 = arith.select %55, %59, %53 : vector<1x128xi1>, vector<1x128xf32>
    %c20_i32 = arith.constant 20 : i32
    %61 = vector.broadcast %c20_i32 : i32 to vector<1x128xi32>
    %62 = arith.cmpi eq, %39, %61 : vector<1x128xi32>
    %63 = vector.shape_cast %18 : vector<1x1xf32> to vector<1x1xf32>
    %64 = vector.broadcast %63 : vector<1x1xf32> to vector<1x128xf32>
    %65 = arith.select %62, %64, %60 : vector<1x128xi1>, vector<1x128xf32>
    %c0_14 = arith.constant 0 : index
    %c0_15 = arith.constant 0 : index
    %66 = vector.load %arg4[%c0_14, %c0_15] : memref<1x128xf32, #tpu.memory_space<vmem>>, vector<1x128xf32>
    tpu.vector_store %arg4[%c0_14, %c0_15], %65 {strides = array<i32>} : memref<1x128xf32, #tpu.memory_space<vmem>>, vector<1x128xf32>,
    return
  }
}

</mosaic_0001>

<bundles_post_ra>
// kernel: tpu_custom_call.1
= control target key start
LH: loop header
LB: loop body
LE: loop exit
PB: predicated region body
PF: predicated region fallthrough
CT: control target
= control target key end

     0   :  { %9 = vsyncpa [#allocation5], 0  ;;  %s524_s0 = inlined_call_operand.hbm [shape: s32[3], index: 0, kind: input, shape index: {}]   ;;  %s525_s1 = inlined_call_operand.vmem [shape: f32[1,128], index: 1, kind: input, shape index: {}]   ;;  %s526_s2 = inlined_call_operand.hbm [shape: f32[64,128], index: 2, kind: input, shape index: {}]   ;;  %s527_s3 = inlined_call_operand.hbm [shape: f32[64,128], index: 3, kind: input, shape index: {}]   ;;  %s528_s4 = inlined_call_operand.hbm [shape: f32[1,128], index: 4, kind: output, shape index: {}]  }
   0x1   :  { %10 = vsyncpa [#allocation3], 0 }
   0x2   :  { %11 = vsyncpa [#allocation8], 0 }
   0x3   :  { %12 = vsyncpa [#allocation4], 0  ;;  %s292_s17 = scalar_lea.hbm %s524_s0, 16 }
   0x4   :  { %p293_p0 = scmp.ne.s32.totalorder %s524_s0, %s292_s17  ;;  %p296_p1 = scmp.lt.u32.totalorder %s292_s17, %s524_s0 }
   0x6   :  { %p298_p2 = pnand %p296_p1, %p293_p0 }
   0x8   :  { %301 = shalt.err (!%p298_p2)
}
   0x9   :  { %s376_s22 = smov [#allocation2]   ;;  %s377_s25 = smov [#allocation6]  }
   0xa   :  { %20 = dma.hbm_to_smem %s524_s0, 16, %s376_s22, [#allocation5]  }
   0xb   :  { %s28_s26 = sshll.u32 %s377_s25, 4  ;;  %s302_s29 = scalar_lea.hbm %s526_s2, 1024  ;;  %s29_s26 = int_to_ptr.vmem [resolvable:$true] %s28_s26 }
   0xc   :  { %p303_p3 = scmp.ne.s32.totalorder %s526_s2, %s302_s29  ;;  %p306_p4 = scmp.lt.u32.totalorder %s302_s29, %s526_s2 }
   0xe   :  { %p308_p5 = pnand %p306_p4, %p303_p3 }
  0x10   :  { %311 = shalt.err (!%p308_p5)
}
  0x11   :  { %s312_s8 = scalar_lea.vmem %s29_s26, 1024  ;;  %p317_p7 = scmp.lt.s32.totalorder %s29_s26, %s29_s26 }
  0x12   :  { %p313_p6 = scmp.ne.s32.totalorder %s29_s26, %s312_s8  ;;  %p318_p8 = scmp.lt.s32.totalorder %s312_s8, %s312_s8 }
  0x14   :  { %p319_p9 = por %p318_p8, %p317_p7 }
  0x16   :  { %p320_p10 = pnand %p319_p9, %p313_p6 }
  0x18   :  { %323 = shalt.err (!%p320_p10)
}
  0x19   :  { %s378_s0 = smov 128   ;;  %s379_s9 = smov 8  }
  0x1a   :  { %34 = dma.hbm_to_vmem [thread:$0]  %s526_s2, 1024, %s29_s26, [#allocation3], %s378_s0, %s378_s0, %s379_s9  }
  0x1b   :  { %s380_s12 = smov [#allocation7]   ;;  %s324_s16 = scalar_lea.hbm %s527_s3, 1024 }
  0x1c   :  { %s40_s13 = sshll.u32 %s380_s12, 4  ;;  %p325_p11 = scmp.ne.s32.totalorder %s527_s3, %s324_s16  ;;  %s41_s13 = int_to_ptr.vmem [resolvable:$true] %s40_s13 }
  0x1d   :  { %p328_p12 = scmp.lt.u32.totalorder %s324_s16, %s527_s3 }
  0x1f   :  { %p330_p13 = pnand %p328_p12, %p325_p11 }
  0x21   :  { %333 = shalt.err (!%p330_p13)
}
  0x22   :  { %s334_s21 = scalar_lea.vmem %s41_s13, 1024  ;;  %p339_p1 = scmp.lt.s32.totalorder %s41_s13, %s41_s13 }
  0x23   :  { %p335_p0 = scmp.ne.s32.totalorder %s41_s13, %s334_s21  ;;  %p340_p2 = scmp.lt.s32.totalorder %s334_s21, %s334_s21 }
  0x25   :  { %p341_p3 = por %p340_p2, %p339_p1 }
  0x27   :  { %p342_p4 = pnand %p341_p3, %p335_p0 }
  0x29   :  { %345 = shalt.err (!%p342_p4)
}
  0x2a   :  { %46 = dma.hbm_to_vmem [thread:$0]  %s527_s3, 1024, %s41_s13, [#allocation8], %s378_s0, %s378_s0, %s379_s9  }
  0x2b   :  { %368 = dma.done.wait [#allocation5], 16  }
  0x2c   :  { %369 = vsyncadd [#allocation5], 4294967280 }
  0x2d   :  { %370 = dma.done.wait [#allocation3], 1024  }
  0x2e   :  { %371 = vsyncadd [#allocation3], 4294966272 }
  0x2f   :  { %372 = dma.done.wait [#allocation8], 1024  }
  0x30   :  { %373 = vsyncadd [#allocation8], 4294966272 }
  0x31   :  { %56 = sfence }
  0x32   :  { %v64_v0 = vld [vmem:[#allocation6 + $0x10] sm:$0xff]  ;;  %v283_v1 = vld [vmem:[%s525_s1] ss:$0 sm:$0xff]  ;;  %v65_v5 = vld [vmem:[#allocation6 + $0x18] sm:$0xff]  ;;  %v109_v25 = vlaneseq  ;;  %s447_s1 = sld [smem:[#allocation2]]  ;;  %s282_s3 = sld [smem:[#allocation2 + $0x2]] }
  0x33   :  { %v62_v2 = vld [vmem:[#allocation6] sm:$0xff]  ;;  %v79_v3 = vsub.f32 %v64_v0, %v283_v1  ;;  %v63_v6 = vld [vmem:[#allocation6 + $0x8] sm:$0xff]  ;;  %v80_v8 = vsub.f32 %v65_v5, %v283_v1  ;;  %v69_v17 = vld [vmem:[#allocation6 + $0x38] sm:$0xff]  ;;  %s281_s25 = sld [smem:[#allocation2 + $0x1]]  ;;  %s381_s29 = smov [#allocation9]  }
  0x34   :  { %v77_v4 = vsub.f32 %v62_v2, %v283_v1  ;;  %v67_v7 = vld [vmem:[#allocation6 + $0x28] sm:$0xff]  ;;  %v78_v9 = vsub.f32 %v63_v6, %v283_v1  ;;  %v66_v10 = vld [vmem:[#allocation6 + $0x20] sm:$0xff]  ;;  %v68_v18 = vld [vmem:[#allocation6 + $0x30] sm:$0xff]  ;;  %v84_v19 = vsub.f32 %v69_v17, %v283_v1  ;;  %v450_v26 = vshrl.u32 %v109_v25, 7  ;;  %s270_s30 = sshll.u32 %s381_s29, 4  ;;  %s271_s30 = int_to_ptr.vmem [resolvable:$true] %s270_s30 }
  0x35   :  { %v87_v11 = vmul.f32 %v79_v3, %v79_v3  ;;  %v82_v13 = vsub.f32 %v67_v7, %v283_v1  ;;  %v88_v14 = vmul.f32 %v80_v8, %v80_v8  ;;  %v81_v16 = vsub.f32 %v66_v10, %v283_v1  ;;  %s346_s5 = scalar_lea.vmem %s271_s30, 16  ;;  %s350_s6 = scalar_lea.vmem %s271_s30, 32 }
  0x36   :  { %v85_v12 = vmul.f32 %v77_v4, %v77_v4  ;;  %v86_v15 = vmul.f32 %v78_v9, %v78_v9  ;;  %v83_v22 = vsub.f32 %v68_v18, %v283_v1  ;;  %v92_v23 = vmul.f32 %v84_v19, %v84_v19  ;;  %p347_p6 = scmp.ne.s32.totalorder %s271_s30, %s346_s5  ;;  %p351_p7 = scmp.lt.s32.totalorder %s271_s30, %s271_s30 }
  0x37   :  { %97 = vadd.xlane.f32.xlu1 %v87_v11  ;;  %v90_v20 = vmul.f32 %v82_v13, %v82_v13  ;;  %v89_v21 = vmul.f32 %v81_v16, %v81_v16  ;;  %v453_v29 = vadd.s32 40, %v450_v26  ;;  %v456_v30 = vadd.s32 32, %v450_v26  ;;  %p352_p8 = scmp.lt.s32.totalorder %s350_s6, %s346_s5 }
  0x38   :  { %93 = vadd.xlane.f32.xlu0 %v85_v12  ;;  %v91_v24 = vmul.f32 %v83_v22, %v83_v22  ;;  %v459_v32 = vadd.s32 8, %v450_v26  ;;  %v462_v34 = vadd.s32 16, %v450_v26  ;;  %v118_v35 = vstv %s447_s1  ;;  %p187_p5 = scmp.gt.s32.totalorder %s447_s1, 0  ;;  %s60_s26 = scvt.s32.f32 %s282_s3 }
  0x39   :  { %v466_v36 = vadd.s32 24, %v450_v26  ;;  %vm124_vm0 = vcmp.lt.s32.totalorder %v453_v29, %v118_v35  ;;  %vm123_vm1 = vcmp.lt.s32.totalorder %v456_v30, %v118_v35  ;;  %v471_v37 = vadd.s32 56, %v450_v26  ;;  %p353_p9 = por %p352_p8, %p351_p7 }
  0x3a   :  { %v474_v38 = vadd.s32 48, %v450_v26  ;;  %vm119_vm2 = vcmp.lt.s32.totalorder %v450_v26, %v118_v35  ;;  %vm120_vm3 = vcmp.lt.s32.totalorder %v459_v32, %v118_v35  ;;  %vm121_vm4 = vcmp.lt.s32.totalorder %v462_v34, %v118_v35  ;;  %s189_s27 = scalar_select %p187_p5, 1, 0 }
  0x3b   :  { %99 = vadd.xlane.f32.xlu1 %v88_v14  ;;  %vm122_vm5 = vcmp.lt.s32.totalorder %v466_v36, %v118_v35  ;;  %vm126_vm6 = vcmp.lt.s32.totalorder %v471_v37, %v118_v35  ;;  %s61_s28 = smul.f32 0.1, %s60_s26  ;;  %p354_p10 = pnand %p353_p9, %p347_p6 }
  0x3c   :  { %95 = vadd.xlane.f32.xlu0 %v86_v15  ;;  %vm125_vm7 = vcmp.lt.s32.totalorder %v474_v38, %v118_v35  ;;  %v205_v35 = vld [vmem:[#allocation7 + $0x20] sm:$0xff] }
  0x3f   :  { %103 = vadd.xlane.f32.xlu1 %v90_v20  ;;  %v201_v20 = vld [vmem:[#allocation7] sm:$0xff] }
  0x40   :  { %101 = vadd.xlane.f32.xlu0 %v89_v21  ;;  %v202_v21 = vld [vmem:[#allocation7 + $0x8] sm:$0xff] }
  0x43   :  { %107 = vadd.xlane.f32.xlu1 %v92_v23  ;;  %v203_v23 = vld [vmem:[#allocation7 + $0x10] sm:$0xff] }
  0x44   :  { %105 = vadd.xlane.f32.xlu0 %v91_v24 }
  0xc4   :  { %v98_v27 = vpop.xlane.xlu1 %97 }
  0xc5   :  { %v94_v28 = vpop.xlane.xlu0 %93  ;;  %v129_v45 = vsel %vm121_vm4, %v98_v27, 3.4028235e+38 }
  0xc6   :  { %v127_v43 = vsel %vm119_vm2, %v94_v28, 3.4028235e+38  ;;  %v204_v28 = vld [vmem:[#allocation7 + $0x18] sm:$0xff] }
  0xc8   :  { %v100_v31 = vpop.xlane.xlu1 %99 }
  0xc9   :  { %v96_v33 = vpop.xlane.xlu0 %95  ;;  %v130_v50 = vsel %vm122_vm5, %v100_v31, 3.4028235e+38 }
  0xca   :  { %v128_v44 = vsel %vm120_vm3, %v96_v33, 3.4028235e+38 }
  0xcc   :  { %v104_v39 = vpop.xlane.xlu1 %103 }
  0xcd   :  { %v102_v40 = vpop.xlane.xlu0 %101  ;;  %v132_v41 = vsel %vm124_vm0, %v104_v39, 3.4028235e+38 }
  0xce   :  { %v131_v42 = vsel %vm123_vm1, %v102_v40, 3.4028235e+38  ;;  %v136_v46 = vmin.f32 %v128_v44, %v132_v41 }
  0xcf   :  { %v135_v47 = vmin.f32 %v127_v43, %v131_v42 }
  0xd0   :  { %v108_v48 = vpop.xlane.xlu1 %107 }
  0xd1   :  { %v106_v49 = vpop.xlane.xlu0 %105  ;;  %v134_v51 = vsel %vm126_vm6, %v108_v48, 3.4028235e+38  ;;  %v139_v55 = vmin.f32 %v135_v47, %v136_v46 }
  0xd2   :  { %v133_v52 = vsel %vm125_vm7, %v106_v49, 3.4028235e+38  ;;  %v138_v53 = vmin.f32 %v130_v50, %v134_v51  ;;  %v247_v49 = vand.u32 127, %v109_v25 }
  0xd3   :  { %v137_v54 = vmin.f32 %v129_v45, %v133_v52 }
  0xd5   :  { %v140_v56 = vmin.f32 %v137_v54, %v138_v53 }
  0xd7   :  { %v141_v57 = vmin.f32 %v139_v55, %v140_v56 }
  0xd9   :  { %v142_v58 = vrot.slane %v141_v57, 4 }
  0xdb   :  { %v143_v59 = vmin.f32 %v141_v57, %v142_v58  ;;  %v382_v58 = vmov 0.0  }
  0xdd   :  { %v144_v60 = vrot.slane %v143_v59, 2 }
  0xdf   :  { %v145_v61 = vmin.f32 %v143_v59, %v144_v60 }
  0xe1   :  { %v146_v62 = vrot.slane %v145_v61, 1 }
  0xe3   :  { %v482_v63 = vmin.f32 %v145_v61, %v146_v62 }
  0xe5   :  { %vm148_vm8 = vcmp.eq.f32.partialorder %v127_v43, %v482_v63  ;;  %vm149_vm9 = vcmp.eq.f32.partialorder %v128_v44, %v482_v63  ;;  %vm150_vm10 = vcmp.eq.f32.partialorder %v129_v45, %v482_v63  ;;  %vm151_vm11 = vcmp.eq.f32.partialorder %v130_v50, %v482_v63 }
  0xe6   :  { %vm152_vm12 = vcmp.eq.f32.partialorder %v131_v42, %v482_v63  ;;  %vm153_vm13 = vcmp.eq.f32.partialorder %v132_v41, %v482_v63  ;;  %vm154_vm14 = vcmp.eq.f32.partialorder %v133_v52, %v482_v63  ;;  %vm155_vm15 = vcmp.eq.f32.partialorder %v134_v51, %v482_v63  ;;  %v206_v41 = vld [vmem:[#allocation7 + $0x28] sm:$0xff] }
  0xe7   :  { %v156_v0 = vsel %vm148_vm8, %v450_v26, 63  ;;  %v157_v1 = vsel %vm149_vm9, %v459_v32, 63  ;;  %v158_v2 = vsel %vm150_vm10, %v462_v34, 63  ;;  %v159_v3 = vsel %vm151_vm11, %v466_v36, 63 }
  0xe8   :  { %v160_v4 = vsel %vm152_vm12, %v456_v30, 63  ;;  %v161_v5 = vsel %vm153_vm13, %v453_v29, 63  ;;  %v162_v6 = vsel %vm154_vm14, %v474_v38, 63  ;;  %v163_v7 = vsel %vm155_vm15, %v471_v37, 63 }
  0xe9   :  { %vm164_vm0 = vcmp.lt.s32.totalorder %v156_v0, %v160_v4  ;;  %vm166_vm1 = vcmp.lt.s32.totalorder %v157_v1, %v161_v5  ;;  %vm168_vm2 = vcmp.lt.s32.totalorder %v158_v2, %v162_v6  ;;  %vm170_vm3 = vcmp.lt.s32.totalorder %v159_v3, %v163_v7 }
  0xea   :  { %v165_v8 = vsel %vm164_vm0, %v156_v0, %v160_v4  ;;  %v167_v9 = vsel %vm166_vm1, %v157_v1, %v161_v5  ;;  %v169_v10 = vsel %vm168_vm2, %v158_v2, %v162_v6  ;;  %v171_v11 = vsel %vm170_vm3, %v159_v3, %v163_v7 }
  0xeb   :  { %vm172_vm4 = vcmp.lt.s32.totalorder %v165_v8, %v167_v9  ;;  %vm174_vm5 = vcmp.lt.s32.totalorder %v169_v10, %v171_v11  ;;  %v190_v50 = vstv %s189_s27  ;;  %vm188_vm3 = vcmp.lt.f32.partialorder %v482_v63, 0.01 }
  0xec   :  { %v173_v12 = vsel %vm172_vm4, %v165_v8, %v167_v9  ;;  %v175_v13 = vsel %vm174_vm5, %v169_v10, %v171_v11  ;;  %vm191_vm4 = vcmp.eq.s32.totalorder %v190_v50, 1 }
  0xed   :  { %vm176_vm6 = vcmp.lt.s32.totalorder %v173_v12, %v175_v13  ;;  %vm192_vm5 = vmand %vm191_vm4, %vm188_vm3 }
  0xee   :  { %v177_v14 = vsel %vm176_vm6, %v173_v12, %v175_v13  ;;  %vm255_vm6 = vcmp.eq.s32.totalorder %v247_v49, 18  ;;  %v284_v59 = vsel %vm192_vm5, 1.0, %v382_v58 }
  0xef   :  { %v178_v15 = vrot.slane %v177_v14, 4 }
  0xf1   :  { %vm179_vm7 = vcmp.lt.s32.totalorder %v177_v14, %v178_v15 }
  0xf2   :  { %v180_v16 = vsel %vm179_vm7, %v177_v14, %v178_v15  ;;  %vm258_vm7 = vcmp.eq.s32.totalorder %v247_v49, 19 }
  0xf3   :  { %v181_v17 = vrot.slane %v180_v16, 2 }
  0xf5   :  { %vm182_vm8 = vcmp.lt.s32.totalorder %v180_v16, %v181_v17 }
  0xf6   :  { %v183_v18 = vsel %vm182_vm8, %v180_v16, %v181_v17  ;;  %vm261_vm8 = vcmp.eq.s32.totalorder %v247_v49, 20 }
  0xf7   :  { %v184_v19 = vrot.slane %v183_v18, 1 }
  0xf9   :  { %vm185_vm9 = vcmp.lt.s32.totalorder %v183_v18, %v184_v19 }
  0xfa   :  { %v186_v22 = vsel %vm185_vm9, %v183_v18, %v184_v19 }
  0xfb   :  { %vm193_vm10 = vcmp.eq.s32.totalorder %v450_v26, %v186_v22  ;;  %vm194_vm11 = vcmp.eq.s32.totalorder %v459_v32, %v186_v22  ;;  %vm195_vm12 = vcmp.eq.s32.totalorder %v462_v34, %v186_v22  ;;  %vm196_vm13 = vcmp.eq.s32.totalorder %v466_v36, %v186_v22  ;;  %v207_v34 = vld [vmem:[#allocation7 + $0x30] sm:$0xff]  ;;  %v208_v36 = vld [vmem:[#allocation7 + $0x38] sm:$0xff] }
  0xfc   :  { %v225_v24 = vsel %vm193_vm10, %v201_v20, 0.0  ;;  %v226_v27 = vsel %vm194_vm11, %v202_v21, 0.0  ;;  %v227_v33 = vsel %vm195_vm12, %v203_v23, 0.0  ;;  %vm197_vm14 = vcmp.eq.s32.totalorder %v456_v30, %v186_v22 }
  0xfd   :  { %v233_v31 = vadd.f32 %v226_v27, %v225_v24  ;;  %v228_v40 = vsel %vm196_vm13, %v204_v28, 0.0  ;;  %vm198_vm15 = vcmp.eq.s32.totalorder %v453_v29, %v186_v22  ;;  %v229_v32 = vsel %vm197_vm14, %v205_v35, 0.0 }
  0xfe   :  { %vm199_vm0 = vcmp.eq.s32.totalorder %v474_v38, %v186_v22  ;;  %v230_v43 = vsel %vm198_vm15, %v206_v41, 0.0  ;;  %vm200_vm1 = vcmp.eq.s32.totalorder %v471_v37, %v186_v22  ;;  %v248_v38 = vstv %s281_s25 }
  0xff   :  { %v234_v39 = vadd.f32 %v233_v31, %v227_v33  ;;  %v231_v45 = vsel %vm199_vm0, %v207_v34, 0.0  ;;  %v232_v46 = vsel %vm200_vm1, %v208_v36, 0.0  ;;  %vm249_vm2 = vcmp.eq.s32.totalorder %v247_v49, %v248_v38 }
 0x100   :  { %v250_v37 = vstv %s61_s28  ;;  %v256_v56 = vcvt.s32.f32 %v186_v22 }
 0x101   :  { %v235_v26 = vadd.f32 %v234_v39, %v228_v40  ;;  %v251_v54 = vsel %vm249_vm2, %v250_v37, 0.0 }
 0x103   :  { %v236_v42 = vadd.f32 %v235_v26, %v229_v32 }
 0x105   :  { %v237_v44 = vadd.f32 %v236_v42, %v230_v43 }
 0x107   :  { %v238_v30 = vadd.f32 %v237_v44, %v231_v45 }
 0x109   :  { %v239_v47 = vadd.f32 %v238_v30, %v232_v46 }
 0x10b   :  { %v240_v29 = vrot.slane %v239_v47, 4 }
 0x10d   :  { %v241_v48 = vadd.f32 %v240_v29, %v239_v47 }
 0x10f   :  { %v242_v51 = vrot.slane %v241_v48, 2 }
 0x111   :  { %v243_v52 = vadd.f32 %v242_v51, %v241_v48 }
 0x113   :  { %v244_v53 = vrot.slane %v243_v52, 1 }
 0x115   :  { %v245_v55 = vadd.f32 %v244_v53, %v243_v52 }
 0x117   :  { %v254_v57 = vsel %vm192_vm5, %v245_v55, %v251_v54 }
 0x118   :  { %v257_v25 = vsel %vm255_vm6, %v256_v56, %v254_v57 }
 0x119   :  { %v260_v60 = vsel %vm258_vm7, %v284_v59, %v257_v25 }
 0x11a   :  { %v262_v61 = vsel %vm261_vm8, %v482_v63, %v260_v60 }
 0x11b   :  { %263 = vst [vmem:[#allocation9] sm:$0x1] %v262_v61 }
 0x11c   :  { %357 = shalt.err (!%p354_p10)
}
 0x11d   :  { %s358_s0 = scalar_lea.hbm %s528_s4, 16 }
 0x11e   :  { %p359_p11 = scmp.ne.s32.totalorder %s528_s4, %s358_s0  ;;  %p362_p12 = scmp.lt.u32.totalorder %s358_s0, %s528_s4 }
 0x120   :  { %p364_p13 = pnand %p362_p12, %p359_p11 }
 0x122   :  { %367 = shalt.err (!%p364_p13)
}
 0x123   :  { %273 = dma.vmem_to_hbm [thread:$0]  %s271_s30, 16, %s528_s4, [#allocation4]  }
 0x124   :  { %374 = dma.done.wait [#allocation4], 16  }
 0x125   :  { %375 = vsyncadd [#allocation4], 4294967280 }
 0x126   :  { %277 = vsyncpa [#allocation3], 1 }
 0x127   :  { %278 = vsyncpa [#allocation8], 1 }
 0x128   :  { %279 = vsyncpa [#allocation4], 1 }
 0x129   :  { %280 = vsyncpa [#allocation5], 1 }

</bundles_post_ra>
